<compile_context>
chip_gen: v6e
topology: v6e:2x2x1
jax: 0.10.0
libtpu: 0.0.40
codegen_flags: <defaults>
</compile_context>

<pallas_src>
import math
from typing import NamedTuple

import jax
import jax.numpy as jnp
from jax.experimental import pallas as pl
from jax.experimental.pallas import tpu as pltpu


# --------------------------------------------------------------------------- #
# helpers
# --------------------------------------------------------------------------- #
def _round_up(x: int, m: int) -> int:
    return ((x + m - 1) // m) * m


def _itemsize(dt) -> int:
    return jnp.dtype(dt).itemsize


def _tpu_defaults():
    """(vmem_capacity_bytes, default_tile_m, default_tile_ff) for this chip."""
    kind = ""
    try:
        kind = jax.devices()[0].device_kind.lower()
    except Exception:
        pass
    vmem_cap = None
    try:
        vmem_cap = int(pltpu.get_tpu_info().vmem_capacity_bytes)
    except Exception:
        pass
    if vmem_cap is None:
        if "v2" in kind or "v3" in kind:
            vmem_cap = 16 << 20
        elif any(v in kind for v in ("v4", "v5", "v6")):
            vmem_cap = 128 << 20
        else:  # v7x / unknown: most restrictive modern VMEM
            vmem_cap = 64 << 20
    if "v6" in kind:
        tile_m, tile_ff = 768, 2048          # 918 TF/s vs ~1.4 TB/s -> big rows
    elif "v5" in kind or "v4" in kind:
        tile_m, tile_ff = 512, 2048
    else:                                     # v7x / unknown: 64 MiB VMEM
        tile_m, tile_ff = 512, 1024
    return vmem_cap, tile_m, tile_ff


def _resident_vmem_estimate(tile_m, d_model_p, d_ff_p, cs, os_):
    return (2 * 2 * d_model_p * d_ff_p * cs            # W1 + W2 (double-buffered)
            + 2 * tile_m * d_model_p * (cs + os_)      # x / out blocks
            + tile_m * d_ff_p * (4 + cs)               # hidden f32 + cast copy
            + 2 * 2 * (d_ff_p + d_model_p) * 4)        # biases


def _tiled_vmem_estimate(tile_m, tile_ff, d_model_p, cs, os_):
    return (2 * 2 * d_model_p * tile_ff * cs           # W1/W2 chunks (dbl-buffered)
            + 2 * tile_m * d_model_p * (cs + os_)      # x / out blocks
            + tile_m * d_model_p * 4                   # f32 accumulator scratch
            + tile_m * tile_ff * (4 + cs)              # hidden chunk + cast copy
            + 2 * 2 * (tile_ff + d_model_p) * 4)       # biases


# --------------------------------------------------------------------------- #
# kernels
# --------------------------------------------------------------------------- #
def _ffn_kernel_resident(x_ref, w1_ref, b1_ref, w2_ref, b2_ref, o_ref):
    # x:(TM, Dp)  W1:(Dp, Fp)  b1:(1, Fp)  W2:(Fp, Dp)  b2:(1, Dp)  o:(TM, Dp)
    h = jnp.dot(x_ref[...], w1_ref[...], preferred_element_type=jnp.float32)
    h = jnp.maximum(h + b1_ref[...], 0.0)
    # TODO(synk): training-mode dropout would mask `h` here via pltpu.prng_seed +
    # pltpu.stateful_bernoulli; eval-mode dropout is the identity.
    out = jnp.dot(h.astype(w2_ref.dtype), w2_ref[...],
                  preferred_element_type=jnp.float32)
    o_ref[...] = (out + b2_ref[...]).astype(o_ref.dtype)


def _ffn_kernel_ff_tiled(x_ref, w1_ref, b1_ref, w2_ref, b2_ref, o_ref, acc_ref):
    # grid = (row_tiles, ff_tiles); acc_ref:(TM, Dp) f32, resident across f.
    f = pl.program_id(1)

    @pl.when(f == 0)
    def _init():
        acc_ref[...] = jnp.zeros_like(acc_ref)

    h = jnp.dot(x_ref[...], w1_ref[...], preferred_element_type=jnp.float32)
    h = jnp.maximum(h + b1_ref[...], 0.0)
    acc_ref[...] += jnp.dot(h.astype(w2_ref.dtype), w2_ref[...],
                            preferred_element_type=jnp.float32)

    @pl.when(f == pl.num_programs(1) - 1)
    def _store():
        o_ref[...] = (acc_ref[...] + b2_ref[...]).astype(o_ref.dtype)


# --------------------------------------------------------------------------- #
# weight preparation (pad + cast hoisted out of the per-call path)
# --------------------------------------------------------------------------- #
class PreparedFFN(NamedTuple):
    w1: jax.Array       # (d_model_p, d_ff_p), compute dtype
    b1: jax.Array       # (1, d_ff_p), f32
    w2: jax.Array       # (d_ff_p, d_model_p), compute dtype
    b2: jax.Array       # (1, d_model_p), f32
    d_model: int
    d_ff: int
    tile_ff: int        # == d_ff_p on the resident path
    resident: bool


def prepare_ffn_weights(w1, b1, w2, b2, *, compute_dtype=None, tile_ff=None,
                        tile_m_hint=None, vmem_limit_bytes=None,
                        force_ff_tiling=False) -> PreparedFFN:
    """Pad + cast weights once; reuse the result across many forward calls."""
    d_model, d_ff = w1.shape
    vmem_cap, def_tm, def_tff = _tpu_defaults()
    if vmem_limit_bytes is None:
        vmem_limit_bytes = min(int(vmem_cap * 0.82), 100 << 20)
    if tile_m_hint is None:
        tile_m_hint = def_tm
    if tile_ff is None:
        tile_ff = def_tff
    if compute_dtype is None:
        # bf16 MXU inputs (f32 accumulation kept) are the big lever on v5e/v6e/v7x.
        compute_dtype = jnp.bfloat16 if w1.dtype == jnp.float32 else w1.dtype
    cs = _itemsize(compute_dtype)

    d_model_p = _round_up(d_model, 128)        # lane-dense feature dims
    d_ff_128 = _round_up(d_ff, 128)

    resident = (not force_ff_tiling) and (
        _resident_vmem_estimate(tile_m_hint, d_model_p, d_ff_128, cs, 4)
        <= vmem_limit_bytes)

    if resident:
        tile_ff_eff = d_ff_p = d_ff_128
    else:
        tile_ff_eff = max(128, min(_round_up(tile_ff, 128), d_ff_128))
        while (_tiled_vmem_estimate(tile_m_hint, tile_ff_eff, d_model_p, cs, 4)
               > vmem_limit_bytes and tile_ff_eff > 256):
            tile_ff_eff = max(128, _round_up(tile_ff_eff // 2, 128))
        d_ff_p = _round_up(d_ff_128, tile_ff_eff)

    # Zero-padding is mathematically inert: padded W1 cols give relu(0)=0 and
    # padded W2 rows contribute nothing.
    w1_p = jnp.pad(w1, ((0, d_model_p - d_model), (0, d_ff_p - d_ff))).astype(compute_dtype)
    w2_p = jnp.pad(w2, ((0, d_ff_p - d_ff), (0, d_model_p - d_model))).astype(compute_dtype)
    b1_p = jnp.pad(b1.astype(jnp.float32), (0, d_ff_p - d_ff)).reshape(1, d_ff_p)
    b2_p = jnp.pad(b2.astype(jnp.float32), (0, d_model_p - d_model)).reshape(1, d_model_p)
    return PreparedFFN(w1_p, b1_p, w2_p, b2_p, d_model, d_ff, tile_ff_eff, resident)


# --------------------------------------------------------------------------- #
# forward pass
# --------------------------------------------------------------------------- #
def ffn_apply(x, prep: PreparedFFN, *, tile_m=None, vmem_limit_bytes=None):
    *lead, d_model = x.shape
    assert d_model == prep.d_model, "last dim of x must equal d_model"
    M = math.prod(lead) if lead else 1

    vmem_cap, def_tm, _ = _tpu_defaults()
    if vmem_limit_bytes is None:
        vmem_limit_bytes = min(int(vmem_cap * 0.82), 100 << 20)
    if tile_m is None:
        tile_m = def_tm

    cdt = prep.w1.dtype
    cs = _itemsize(cdt)
    out_dtype = x.dtype
    os_ = _itemsize(out_dtype)
    d_model_p, d_ff_p = prep.w1.shape
    tile_ff = prep.tile_ff
    resident = prep.resident

    # Row tile: multiple of 16 for packed (bf16) sublanes, 8 otherwise.
    row_align = 16 if cs < 4 else 8
    tile_m_eff = max(row_align,
                     min(_round_up(tile_m, row_align), _round_up(M, row_align)))
    # Keep >= 2 row tiles when there is enough work so the "parallel" axis can
    # feed both v7x TensorCores (cheap no-op on single-TC v5e/v6e).
    if M >= 4 * row_align:
        tile_m_eff = min(tile_m_eff, _round_up((M + 1) // 2, row_align))

    def _est(tm):
        if resident:
            return _resident_vmem_estimate(tm, d_model_p, d_ff_p, cs, os_)
        return _tiled_vmem_estimate(tm, tile_ff, d_model_p, cs, os_)

    while _est(tile_m_eff) > vmem_limit_bytes and tile_m_eff > row_align:
        tile_m_eff = max(row_align, _round_up(tile_m_eff // 2, row_align))

    M_p = _round_up(M, tile_m_eff)
    num_i = M_p // tile_m_eff
    num_f = d_ff_p // tile_ff

    x2 = x.reshape(M, d_model)
    if M_p != M or d_model_p != d_model:
        x2 = jnp.pad(x2, ((0, M_p - M), (0, d_model_p - d_model)))
    x2 = x2.astype(cdt)

    # Advisory cost estimate with the *actual* traffic of this schedule.
    weight_bytes = 2 * d_model_p * d_ff_p * cs
    cost = pl.CostEstimate(
        flops=4 * M * prep.d_model * prep.d_ff,
        transcendentals=0,
        bytes_accessed=int(M_p * d_model_p * (cs + os_)
                           + (1 if resident else num_i) * weight_bytes
                           + (d_ff_p + d_model_p) * 4),
    )

    if resident:
        grid = (num_i,)
        in_specs = [
            pl.BlockSpec((tile_m_eff, d_model_p), lambda i: (i, 0)),
            # Constant block index -> weights stay VMEM-resident across row tiles.
            pl.BlockSpec((d_model_p, d_ff_p), lambda i: (0, 0)),
            pl.BlockSpec((1, d_ff_p), lambda i: (0, 0)),
            pl.BlockSpec((d_ff_p, d_model_p), lambda i: (0, 0)),
            pl.BlockSpec((1, d_model_p), lambda i: (0, 0)),
        ]
        out_spec = pl.BlockSpec((tile_m_eff, d_model_p), lambda i: (i, 0))
        scratch = []
        kernel = _ffn_kernel_resident
        dims = ("parallel",)
    else:
        grid = (num_i, num_f)
        in_specs = [
            pl.BlockSpec((tile_m_eff, d_model_p), lambda i, f: (i, 0)),
            pl.BlockSpec((d_model_p, tile_ff), lambda i, f: (0, f)),
            pl.BlockSpec((1, tile_ff), lambda i, f: (0, f)),
            pl.BlockSpec((tile_ff, d_model_p), lambda i, f: (f, 0)),
            pl.BlockSpec((1, d_model_p), lambda i, f: (0, 0)),
        ]
        # Output block constant across f -> resident accumulator, written once.
        out_spec = pl.BlockSpec((tile_m_eff, d_model_p), lambda i, f: (i, 0))
        scratch = [pltpu.VMEM((tile_m_eff, d_model_p), jnp.float32)]
        kernel = _ffn_kernel_ff_tiled
        dims = ("parallel", "arbitrary")

    out2 = pl.pallas_call(
        kernel,
        out_shape=jax.ShapeDtypeStruct((M_p, d_model_p), out_dtype),
        grid_spec=pltpu.PrefetchScalarGridSpec(
            num_scalar_prefetch=0,
            grid=grid,
            in_specs=in_specs,
            out_specs=out_spec,
            scratch_shapes=scratch,
        ),
        compiler_params=pltpu.CompilerParams(
            dimension_semantics=dims,
            vmem_limit_bytes=int(vmem_limit_bytes),
        ),
        cost_estimate=cost,
    )(x2, prep.w1, prep.b1, prep.w2, prep.b2)

    out = out2[:M, :prep.d_model]
    return out.reshape(*lead, prep.d_model) if lead else out.reshape(prep.d_model)


def positionwise_feed_forward(x, w1, b1, w2, b2, *, compute_dtype=None,
                              tile_m=None, tile_ff=None, vmem_limit_bytes=None,
                              force_ff_tiling=False):
    """Convenience wrapper; for repeated calls, hoist prepare_ffn_weights()."""
    prep = prepare_ffn_weights(w1, b1, w2, b2, compute_dtype=compute_dtype,
                               tile_ff=tile_ff, tile_m_hint=tile_m,
                               vmem_limit_bytes=vmem_limit_bytes,
                               force_ff_tiling=force_ff_tiling)
    return ffn_apply(x, prep, tile_m=tile_m, vmem_limit_bytes=vmem_limit_bytes)


def reference_ffn(x, w1, b1, w2, b2):
    h = jnp.maximum(jnp.einsum("...d,df->...f", x, w1) + b1, 0.0)
    return jnp.einsum("...f,fd->...d", h, w2) + b2


# --------------------------------------------------------------------------- #
# demo / self-test
# --------------------------------------------------------------------------- #
if __name__ == "__main__":
    batch, seq, d_model, d_ff = 2, 8, 32, 256

    key = jax.random.PRNGKey(0)
    kx, kw1, kb1, kw2, kb2 = jax.random.split(key, 5)

    x = jax.random.normal(kx, (batch, seq, d_model), dtype=jnp.float32)

    # nn.Linear-style uniform init; weights stored pre-transposed so the kernel
    # computes x @ W + b:  w1 is (d_model, d_ff), w2 is (d_ff, d_model).
    bound1 = 1.0 / (d_model ** 0.5)
    bound2 = 1.0 / (d_ff ** 0.5)
    w1 = jax.random.uniform(kw1, (d_model, d_ff), jnp.float32, -bound1, bound1)
    b1 = jax.random.uniform(kb1, (d_ff,), jnp.float32, -bound1, bound1)
    w2 = jax.random.uniform(kw2, (d_ff, d_model), jnp.float32, -bound2, bound2)
    b2 = jax.random.uniform(kb2, (d_model,), jnp.float32, -bound2, bound2)

    y_ref = reference_ffn(x, w1, b1, w2, b2)

    # 1) Default fast path: bf16 MXU inputs, f32 accumulation, weights padded /
    #    cast once (hoisted) and VMEM-resident (single "parallel" grid axis).
    prep = prepare_ffn_weights(w1, b1, w2, b2)
    y_fast = jax.block_until_ready(ffn_apply(x, prep))
    assert y_fast.shape == x.shape
    err_fast = float(jnp.max(jnp.abs(y_fast - y_ref)))
    assert jnp.allclose(y_fast, y_ref, atol=8e-2, rtol=5e-2), err_fast

    # 2) Exactness check on the ff-tiled accumulator path: f32 compute, forced
    #    f tiling with two d_ff chunks (exercises init/accumulate/store).
    y_exact = positionwise_feed_forward(
        x, w1, b1, w2, b2, compute_dtype=jnp.float32,
        force_ff_tiling=True, tile_ff=128)
    y_exact = jax.block_until_ready(y_exact)
    err_exact = float(jnp.max(jnp.abs(y_exact - y_ref)))
    assert jnp.allclose(y_exact, y_ref, atol=1e-4, rtol=1e-4), err_exact

    print("KERNEL_OK")
</pallas_src>

<mosaic_0001>
module attributes {stable_mosaic.version = 11 : i64} {
  func.func @_ffn_kernel_resident(%arg0: i32, %arg1: memref<16x128xbf16, #tpu.memory_space<vmem>>, %arg2: memref<128x256xbf16, #tpu.memory_space<vmem>>, %arg3: memref<1x256xf32, #tpu.memory_space<vmem>>, %arg4: memref<256x128xbf16, #tpu.memory_space<vmem>>, %arg5: memref<1x128xf32, #tpu.memory_space<vmem>>, %arg6: memref<16x128xf32, #tpu.memory_space<vmem>>) attributes {dimension_semantics = [#tpu.dimension_semantics<parallel>], iteration_bounds = array<i64: 1>, scalar_prefetch = 0 : i64, scratch_operands = 0 : i64, tpu.core_type = #tpu.core_type<tc>, window_params = [{transform_indices = @transform_0, window_bounds = array<i64: 16, 128>}, {pipeline_mode = #tpu.pipeline_mode<synchronous>, transform_indices = @transform_1, window_bounds = array<i64: 128, 256>}, {pipeline_mode = #tpu.pipeline_mode<synchronous>, transform_indices = @transform_2, window_bounds = array<i64: 1, 256>}, {pipeline_mode = #tpu.pipeline_mode<synchronous>, transform_indices = @transform_3, window_bounds = array<i64: 256, 128>}, {pipeline_mode = #tpu.pipeline_mode<synchronous>, transform_indices = @transform_4, window_bounds = array<i64: 1, 128>}, {transform_indices = @transform_5, window_bounds = array<i64: 16, 128>}]} {
    %c0 = arith.constant 0 : index
    %c0_0 = arith.constant 0 : index
    %0 = vector.load %arg1[%c0, %c0_0] : memref<16x128xbf16, #tpu.memory_space<vmem>>, vector<16x128xbf16>
    %c0_1 = arith.constant 0 : index
    %c0_2 = arith.constant 0 : index
    %1 = vector.load %arg2[%c0_1, %c0_2] : memref<128x256xbf16, #tpu.memory_space<vmem>>, vector<128x256xbf16>
    %cst = arith.constant dense<0.000000e+00> : vector<16x256xf32>
    %2 = tpu.matmul %0, %1, %cst {dimension_numbers = #tpu.dot_dimension_numbers<[1], [0], [0], [1], [0, 0, 1, 1], [], []>} : vector<16x128xbf16>, vector<128x256xbf16>, vector<16x256xf32> -> vector<16x256xf32>
    %c0_3 = arith.constant 0 : index
    %c0_4 = arith.constant 0 : index
    %3 = vector.load %arg3[%c0_3, %c0_4] : memref<1x256xf32, #tpu.memory_space<vmem>>, vector<1x256xf32>
    %4 = vector.broadcast %3 : vector<1x256xf32> to vector<16x256xf32>
    %5 = arith.addf %2, %4 : vector<16x256xf32>
    %cst_5 = arith.constant 0.000000e+00 : f32
    %6 = vector.broadcast %cst_5 : f32 to vector<16x256xf32>
    %7 = arith.maximumf %5, %6 : vector<16x256xf32>
    %8 = arith.truncf %7 : vector<16x256xf32> to vector<16x256xbf16>
    %c0_6 = arith.constant 0 : index
    %c0_7 = arith.constant 0 : index
    %9 = vector.load %arg4[%c0_6, %c0_7] : memref<256x128xbf16, #tpu.memory_space<vmem>>, vector<256x128xbf16>
    %cst_8 = arith.constant dense<0.000000e+00> : vector<16x128xf32>
    %10 = tpu.matmul %8, %9, %cst_8 {dimension_numbers = #tpu.dot_dimension_numbers<[1], [0], [0], [1], [0, 0, 1, 1], [], []>} : vector<16x256xbf16>, vector<256x128xbf16>, vector<16x128xf32> -> vector<16x128xf32>
    %c0_9 = arith.constant 0 : index
    %c0_10 = arith.constant 0 : index
    %11 = vector.load %arg5[%c0_9, %c0_10] : memref<1x128xf32, #tpu.memory_space<vmem>>, vector<1x128xf32>
    %12 = vector.broadcast %11 : vector<1x128xf32> to vector<16x128xf32>
    %13 = arith.addf %10, %12 : vector<16x128xf32>
    %c0_11 = arith.constant 0 : index
    %c0_12 = arith.constant 0 : index
    %14 = vector.load %arg6[%c0_11, %c0_12] : memref<16x128xf32, #tpu.memory_space<vmem>>, vector<16x128xf32>
    tpu.vector_store %arg6[%c0_11, %c0_12], %13 {strides = array<i32>} : memref<16x128xf32, #tpu.memory_space<vmem>>, vector<16x128xf32>,
    return
  }
  func.func @transform_0(%arg0: i32) -> (i32, i32) {
    %c0_i32 = arith.constant 0 : i32
    %c0_i32_0 = arith.constant 0 : i32
    return %arg0, %c0_i32 : i32, i32
  }
  func.func @transform_1(%arg0: i32) -> (i32, i32) {
    %c0_i32 = arith.constant 0 : i32
    %c0_i32_0 = arith.constant 0 : i32
    %c0_i32_1 = arith.constant 0 : i32
    return %c0_i32, %c0_i32_0 : i32, i32
  }
  func.func @transform_2(%arg0: i32) -> (i32, i32) {
    %c0_i32 = arith.constant 0 : i32
    %c0_i32_0 = arith.constant 0 : i32
    %c0_i32_1 = arith.constant 0 : i32
    return %c0_i32, %c0_i32_0 : i32, i32
  }
  func.func @transform_3(%arg0: i32) -> (i32, i32) {
    %c0_i32 = arith.constant 0 : i32
    %c0_i32_0 = arith.constant 0 : i32
    %c0_i32_1 = arith.constant 0 : i32
    return %c0_i32, %c0_i32_0 : i32, i32
  }
  func.func @transform_4(%arg0: i32) -> (i32, i32) {
    %c0_i32 = arith.constant 0 : i32
    %c0_i32_0 = arith.constant 0 : i32
    %c0_i32_1 = arith.constant 0 : i32
    return %c0_i32, %c0_i32_0 : i32, i32
  }
  func.func @transform_5(%arg0: i32) -> (i32, i32) {
    %c0_i32 = arith.constant 0 : i32
    %c0_i32_0 = arith.constant 0 : i32
    return %arg0, %c0_i32 : i32, i32
  }
}

</mosaic_0001>

<bundles_post_ra>
// kernel: tpu_custom_call.1
= control target key start
LH: loop header
LB: loop body
LE: loop exit
PB: predicated region body
PF: predicated region fallthrough
CT: control target
= control target key end

     0   :  { %10 = vsyncpa [#allocation3], 0  ;;  %s679_s0 = inlined_call_operand.hbm [shape: bf16[16,128], index: 0, kind: input, shape index: {}]   ;;  %s680_s1 = inlined_call_operand.hbm [shape: bf16[128,256], index: 1, kind: input, shape index: {}]   ;;  %s681_s2 = inlined_call_operand.vmem [shape: f32[1,256], index: 2, kind: input, shape index: {}]   ;;  %s682_s3 = inlined_call_operand.hbm [shape: bf16[256,128], index: 3, kind: input, shape index: {}]   ;;  %s683_s4 = inlined_call_operand.vmem [shape: f32[1,128], index: 4, kind: input, shape index: {}]   ;;  %s684_s5 = inlined_call_operand.hbm [shape: f32[16,128], index: 5, kind: output, shape index: {}]  }
   0x1   :  { %11 = vsyncpa [#allocation6], 0 }
   0x2   :  { %12 = vsyncpa [#allocation4], 0  ;;  %s616_s18 = smov [#allocation5]  }
   0x3   :  { %s30_s19 = sshll.u32 %s616_s18, 4  ;;  %s31_s19 = int_to_ptr.vmem [resolvable:$true] %s30_s19 }
   0x4   :  { %s538_s20 = scalar_lea.vmem %s31_s19, 2048  ;;  %p543_p1 = scmp.lt.s32.totalorder %s31_s19, %s31_s19 }
   0x5   :  { %p539_p0 = scmp.ne.s32.totalorder %s31_s19, %s538_s20  ;;  %p544_p2 = scmp.lt.s32.totalorder %s538_s20, %s538_s20 }
   0x7   :  { %p545_p3 = por %p544_p2, %p543_p1 }
   0x9   :  { %p546_p4 = pnand %p545_p3, %p539_p0 }
   0xb   :  { %549 = shalt.err (!%p546_p4)
}
   0xc   :  { %s617_s21 = smov 128   ;;  %s618_s22 = smov 8  }
   0xd   :  { %36 = dma.hbm_to_vmem [thread:$0]  %s680_s1, 2048, %s31_s19, [#allocation6], %s617_s21, %s617_s21, %s618_s22  }
   0xe   :  { %s619_s25 = smov [#allocation2]  }
   0xf   :  { %s18_s26 = sshll.u32 %s619_s25, 4  ;;  %s19_s26 = int_to_ptr.vmem [resolvable:$true] %s18_s26 }
  0x10   :  { %s558_s27 = scalar_lea.vmem %s19_s26, 128  ;;  %p563_p6 = scmp.lt.s32.totalorder %s19_s26, %s19_s26 }
  0x11   :  { %p559_p5 = scmp.ne.s32.totalorder %s19_s26, %s558_s27  ;;  %p564_p7 = scmp.lt.s32.totalorder %s558_s27, %s558_s27 }
  0x13   :  { %p565_p8 = por %p564_p7, %p563_p6 }
  0x15   :  { %p566_p9 = pnand %p565_p8, %p559_p5 }
  0x17   :  { %569 = shalt.err (!%p566_p9)
}
  0x18   :  { %s620_s28 = smov 64   ;;  %s621_s29 = smov 4  }
  0x19   :  { %24 = dma.hbm_to_vmem [thread:$0]  %s679_s0, 128, %s19_s26, [#allocation3], %s620_s28, %s620_s28, %s621_s29  }
  0x1a   :  { %s622_s7 = smov [#allocation7]  }
  0x1b   :  { %s44_s8 = sshll.u32 %s622_s7, 4  ;;  %s45_s8 = int_to_ptr.vmem [resolvable:$true] %s44_s8 }
  0x1c   :  { %s578_s1 = scalar_lea.vmem %s45_s8, 2048  ;;  %p583_p11 = scmp.lt.s32.totalorder %s45_s8, %s45_s8 }
  0x1d   :  { %p579_p10 = scmp.ne.s32.totalorder %s45_s8, %s578_s1  ;;  %p584_p12 = scmp.lt.s32.totalorder %s578_s1, %s578_s1 }
  0x1f   :  { %p585_p13 = por %p584_p12, %p583_p11 }
  0x21   :  { %p586_p0 = pnand %p585_p13, %p579_p10 }
  0x23   :  { %589 = shalt.err (!%p586_p0)
}
  0x24   :  { %50 = dma.hbm_to_vmem [thread:$0]  %s682_s3, 2048, %s45_s8, [#allocation6], %s620_s28, %s620_s28, %s621_s29  }
  0x25   :  { %610 = dma.done.wait [#allocation3], 128  }
  0x26   :  { %611 = vsyncadd [#allocation3], 4294967168 }
  0x27   :  { %612 = dma.done.wait [#allocation6], 4096  }
  0x28   :  { %613 = vsyncadd [#allocation6], 4294963200  ;;  %v623_v0 = vmov 0   ;;  %v489_v1 = vld [vmem:[#allocation5 + $0x74] ss:$8 sps:$4 sm:$0xff]   ;;  %v518_v16 = vld [vmem:[#allocation7 + $0x68] sm:$0xff]   ;;  %v83_v34 = vlaneseq }
  0x29   :  { %211 = vmatprep.mubr.bf16.mxu0 %v623_v0  ;;  %v491_v2 = vld [vmem:[#allocation5 + $0x70] ss:$8 sps:$4 sm:$0xff]   ;;  %179 = vmatprep.subr.bf16.mxu0 %v489_v1  ;;  %v492_v3 = vld [vmem:[#allocation5 + $0x64] ss:$8 sps:$4 sm:$0xff]   ;;  %v494_v4 = vld [vmem:[#allocation5 + $0x60] ss:$8 sps:$4 sm:$0xff]  }
  0x2a   :  { %180 = vmatpush1.bf16.msra.mxu0 %v491_v2  ;;  %v495_v5 = vld [vmem:[#allocation5 + $0x54] ss:$8 sps:$4 sm:$0xff]   ;;  %v497_v6 = vld [vmem:[#allocation5 + $0x50] ss:$8 sps:$4 sm:$0xff]   ;;  %v498_v7 = vld [vmem:[#allocation5 + $0x44] ss:$8 sps:$4 sm:$0xff]  }
  0x2b   :  { %181 = vmatprep.subr.bf16.mxu0 %v492_v3  ;;  %v500_v8 = vld [vmem:[#allocation5 + $0x40] ss:$8 sps:$4 sm:$0xff]   ;;  %v501_v9 = vld [vmem:[#allocation5 + $0x34] ss:$8 sps:$4 sm:$0xff]   ;;  %v503_v11 = vld [vmem:[#allocation5 + $0x30] ss:$8 sps:$4 sm:$0xff]  }
  0x2c   :  { %v514_v10 = vld [vmem:[#allocation7 + $0x78] sm:$0xff]   ;;  %v504_v13 = vld [vmem:[#allocation5 + $0x24] ss:$8 sps:$4 sm:$0xff]   ;;  %v516_v14 = vld [vmem:[#allocation7 + $0x70] sm:$0xff]   ;;  %v84_v35 = vshrl.u32 %v83_v34, 7  ;;  %s624_s12 = smov [#allocation8]  }
  0x2d   :  { %v515_v12 = vld [vmem:[#allocation7 + $0x38] sm:$0xff]   ;;  %458 = vmatprep.subr.bf16.mxu1 %v514_v10  ;;  %v517_v15 = vld [vmem:[#allocation7 + $0x30] sm:$0xff]   ;;  %v506_v17 = vld [vmem:[#allocation5 + $0x20] ss:$8 sps:$4 sm:$0xff]   ;;  %s411_s13 = sshll.u32 %s624_s12, 4  ;;  %s412_s13 = int_to_ptr.vmem [resolvable:$true] %s411_s13 }
  0x2e   :  { %182 = vmatpush1.bf16.msra.mxu0 %v494_v4  ;;  %459 = vmatpush3.bf16.msra.mxu1 %v515_v12  ;;  %v507_v18 = vld [vmem:[#allocation5 + $0x14] ss:$8 sps:$4 sm:$0xff]   ;;  %v519_v19 = vld [vmem:[#allocation7 + $0x28] sm:$0xff]   ;;  %v520_v20 = vld [vmem:[#allocation7 + $0x60] sm:$0xff]   ;;  %v89_v36 = vsub.s32 1, %v84_v35  ;;  %v85_v37 = vsub.s32 0, %v84_v35  ;;  %p595_p2 = scmp.lt.s32.totalorder %s412_s13, %s412_s13 }
  0x2f   :  { %183 = vmatprep.subr.bf16.mxu0 %v495_v5  ;;  %460 = vmatprep.subr.bf16.mxu1 %v516_v14  ;;  %v509_v21 = vld [vmem:[#allocation5 + $0x10] ss:$8 sps:$4 sm:$0xff]   ;;  %v521_v22 = vld [vmem:[#allocation7 + $0x20] sm:$0xff]   ;;  %v526_v30 = vld [vmem:[#allocation7 + $0x48] sm:$0xff]   ;;  %s590_s14 = scalar_lea.vmem %s412_s13, 256 }
  0x30   :  { %v510_v23 = vld [vmem:[#allocation5 + $0x4] ss:$8 sps:$4 sm:$0xff]   ;;  %v522_v24 = vld [vmem:[#allocation7 + $0x58] sm:$0xff]   ;;  %v512_v25 = vld [vmem:[#allocation5] ss:$8 sps:$4 sm:$0xff]   ;;  %p591_p1 = scmp.ne.s32.totalorder %s412_s13, %s590_s14  ;;  %p596_p3 = scmp.lt.s32.totalorder %s590_s14, %s590_s14 }
  0x31   :  { %v523_v26 = vld [vmem:[#allocation7 + $0x18] sm:$0xff]   ;;  %v524_v28 = vld [vmem:[#allocation7 + $0x50] sm:$0xff]   ;;  %v527_v31 = vld [vmem:[#allocation7 + $0x8] sm:$0xff]  }
  0x32   :  { %184 = vmatpush1.bf16.msra.mxu0 %v497_v6  ;;  %461 = vmatpush3.bf16.msra.mxu1 %v517_v15  ;;  %v513_v27 = vld [vmem:[#allocation2] sm:$0xff]   ;;  %v525_v29 = vld [vmem:[#allocation7 + $0x10] sm:$0xff]   ;;  %v528_v32 = vld [vmem:[#allocation7 + $0x40] sm:$0xff]   ;;  %p597_p4 = por %p596_p3, %p595_p2 }
  0x33   :  { %185 = vmatprep.subr.bf16.mxu0 %v498_v7  ;;  %462 = vmatprep.subr.bf16.mxu1 %v518_v16  ;;  %v529_v33 = vld [vmem:[#allocation7] sm:$0xff]   ;;  %v81_v38 = vld [vmem:[%s681_s2] sm:$0x3] }
  0x34   :  { %v90_v40 = vrot.slane %v81_v38, %v89_v36  ;;  %v86_v41 = vrot.slane %v81_v38, %v85_v37  ;;  %v441_v56 = vld [vmem:[%s683_s4] ss:$0 sm:$0xff]  ;;  %p598_p5 = pnand %p597_p4, %p591_p1 }
  0x36   :  { %186 = vmatpush1.bf16.msra.mxu0 %v500_v8  ;;  %463 = vmatpush3.bf16.msra.mxu1 %v519_v19 }
  0x37   :  { %187 = vmatprep.subr.bf16.mxu0 %v501_v9  ;;  %464 = vmatprep.subr.bf16.mxu1 %v520_v20 }
  0x3a   :  { %188 = vmatpush1.bf16.msra.mxu0 %v503_v11  ;;  %465 = vmatpush3.bf16.msra.mxu1 %v521_v22 }
  0x3b   :  { %189 = vmatprep.subr.bf16.mxu0 %v504_v13  ;;  %466 = vmatprep.subr.bf16.mxu1 %v522_v24 }
  0x3e   :  { %190 = vmatpush1.bf16.msra.mxu0 %v506_v17  ;;  %467 = vmatpush3.bf16.msra.mxu1 %v523_v26 }
  0x3f   :  { %191 = vmatprep.subr.bf16.mxu0 %v507_v18  ;;  %468 = vmatprep.subr.bf16.mxu1 %v524_v28 }
  0x42   :  { %192 = vmatpush1.bf16.msra.mxu0 %v509_v21  ;;  %469 = vmatpush3.bf16.msra.mxu1 %v525_v29 }
  0x43   :  { %193 = vmatprep.subr.bf16.mxu0 %v510_v23  ;;  %470 = vmatprep.subr.bf16.mxu1 %v526_v30 }
  0x46   :  { %194 = vmatpush1.bf16.msra.mxu0 %v512_v25  ;;  %471 = vmatpush3.bf16.msra.mxu1 %v527_v31 }
  0x47   :  { %472 = vmatprep.subr.bf16.mxu1 %v528_v32 }
  0x49   :  { %212 = vmatmul.mubr.bf16.vlgmr.msra.gmra.mxu0 %v513_v27 }
  0x4a   :  { %473 = vmatpush3.bf16.msra.mxu1 %v529_v33 }
 0x109   :  { %v213_v39 = vpop.f32.mrf.mxu0 }
 0x10a   :  { %v214_v46 = vadd.f32 %v213_v39, %v86_v41 }
 0x10b   :  { %v215_v42 = vpop.f32.mrf.mxu0 }
 0x10c   :  { %v216_v44 = vadd.f32 %v215_v42, %v90_v40  ;;  %v222_v52 = vmax.f32 %v214_v46, 0.0 }
 0x10d   :  { %v217_v43 = vpop.f32.mrf.mxu0 }
 0x10e   :  { %v218_v45 = vadd.f32 %v217_v43, %v86_v41  ;;  %v223_v50 = vmax.f32 %v216_v44, 0.0 }
 0x10f   :  { %v219_v47 = vpop.f32.mrf.mxu0 }
 0x110   :  { %v220_v48 = vadd.f32 %v219_v47, %v90_v40  ;;  %v224_v49 = vmax.f32 %v218_v45, 0.0 }
 0x112   :  { %v225_v51 = vmax.f32 %v220_v48, 0.0  ;;  %v226_v54 = vpack.c.bf16 %v224_v49, %v222_v52 }
 0x114   :  { %v227_v53 = vpack.c.bf16 %v225_v51, %v223_v50 }
 0x116   :  { %395 = vmatprep.mubr.bf16.mxu1 %v227_v53 }
 0x117   :  { %396 = vmatmul.mubr.bf16.vlgmr.msra.gmra.mxu1 %v226_v54 }
 0x1d7   :  { %v474_v55 = vpop.f32.mrf.mxu1 }
 0x1d9   :  { %v475_v57 = vpop.f32.mrf.mxu1 }
 0x1da   :  { %v476_v58 = vadd.f32 %v475_v57, %v474_v55 }
 0x1db   :  { %v477_v59 = vpop.f32.mrf.mxu1 }
 0x1dc   :  { %v398_v60 = vadd.f32 %v476_v58, %v441_v56 }
 0x1dd   :  { %v478_v61 = vpop.f32.mrf.mxu1 }
 0x1de   :  { %404 = vst [vmem:[#allocation8] sm:$0xff] %v398_v60  ;;  %v479_v62 = vadd.f32 %v478_v61, %v477_v59 }
 0x1e0   :  { %v401_v63 = vadd.f32 %v479_v62, %v441_v56 }
 0x1e2   :  { %405 = vst [vmem:[#allocation8 + $0x8] sm:$0xff] %v401_v63 }
 0x1e3   :  { %601 = shalt.err (!%p598_p5)
}
 0x1e4   :  { %417 = dma.vmem_to_hbm [thread:$0]  %s412_s13, 256, %s684_s5, [#allocation4], %s617_s21, %s617_s21, %s618_s22  }
 0x1e5   :  { %614 = dma.done.wait [#allocation4], 256  }
 0x1e6   :  { %615 = vsyncadd [#allocation4], 4294967040 }
 0x1e7   :  { %421 = vsyncpa [#allocation3], 1 }
 0x1e8   :  { %422 = vsyncpa [#allocation6], 1 }
 0x1e9   :  { %423 = vsyncpa [#allocation4], 1 }

</bundles_post_ra>
